<compile_context>
chip_gen: v6e
topology: v6e:2x2x1
jax: 0.10.0
libtpu: 0.0.40
codegen_flags: <defaults>
</compile_context>

<pallas_src>
import jax
import jax.numpy as jnp
from jax.experimental import pallas as pl
from jax.experimental.pallas import tpu as pltpu


def _pe_add_kernel(x_ref, pe_ref, o_ref):
    # x_ref:  (Bb, ts, D) tile of the input (Bb batch elements, one seq tile)
    # pe_ref: (ts, D)     positional-embedding rows for this seq tile (shared across Bb)
    # o_ref:  (Bb, ts, D)
    x = x_ref[...].astype(o_ref.dtype)
    pe = pe_ref[...].astype(o_ref.dtype)
    o_ref[...] = x + pe[None, :, :]


def _round_up(n, m):
    return ((n + m - 1) // m) * m


def _sublane_multiple(itemsize):
    # f32 -> 8, bf16/f16 -> 16, int8/fp8 -> 32
    return max(8, 32 // max(1, itemsize))


def _pick_tiles(B, S, D, x_itemsize, pe_itemsize, block_cap_bytes=4 * 1024 * 1024):
    """Pick (Bb, ts): batch-fold and seq-tile sizes.

    ts is always a multiple of the dtype sublane multiple (rounded up past S when
    needed; Pallas masks the ragged edge), so both the x and pe BlockSpecs satisfy
    the (8,128) rule for any S / max_seq_len. Block bytes are capped so that
    double-buffered x + out + pe stay well under the v7x VMEM budget.
    """
    m = _sublane_multiple(x_itemsize)
    row_bytes = max(1, D * max(x_itemsize, pe_itemsize))  # pe may be wider than x

    ts_full = _round_up(S, m)
    max_rows = max(m, (block_cap_bytes // row_bytes // m) * m)
    ts = min(ts_full, max_rows)
    num_s = pl.cdiv(S, ts)

    per_batch_bytes = max(1, ts * D * x_itemsize)
    Bb = max(1, min(B, block_cap_bytes // per_batch_bytes))

    # Keep >= 2 blocks along the parallel axes for v7x's 2 TensorCores when possible.
    if num_s * pl.cdiv(B, Bb) < 2 and B >= 2:
        Bb = pl.cdiv(B, 2)
    return Bb, ts


def positional_encoding_forward(x, pe_table, *, donate_x=False):
    """x: [B, S, D]; pe_table: [max_seq_len, D] learnable embedding table."""
    B, S, D = x.shape
    max_seq_len, D_pe = pe_table.shape
    assert D_pe == D, "pe_table d_model must match x"
    assert S <= max_seq_len, "seq_len exceeds max_seq_len"

    # Match PyTorch type promotion (x + pe(positions)).
    out_dtype = jnp.promote_types(x.dtype, pe_table.dtype)

    Bb, ts = _pick_tiles(
        B, S, D,
        jnp.dtype(x.dtype).itemsize,
        jnp.dtype(pe_table.dtype).itemsize,
    )
    num_s = pl.cdiv(S, ts)
    num_b = pl.cdiv(B, Bb)

    io_aliases = {}
    if donate_x and out_dtype == jnp.dtype(x.dtype):
        io_aliases = {0: 0}  # write the result in place of x

    return pl.pallas_call(
        _pe_add_kernel,
        out_shape=jax.ShapeDtypeStruct((B, S, D), out_dtype),
        grid_spec=pltpu.PrefetchScalarGridSpec(
            num_scalar_prefetch=0,
            # batch-block innermost: pe's block index is constant across consecutive
            # steps, so its DMA is not re-issued per batch block.
            grid=(num_s, num_b),
            in_specs=[
                pl.BlockSpec((Bb, ts, D), lambda s, b: (b, s, 0)),  # x tile
                pl.BlockSpec((ts, D), lambda s, b: (s, 0)),         # pe rows for this seq tile
            ],
            out_specs=pl.BlockSpec((Bb, ts, D), lambda s, b: (b, s, 0)),
        ),
        compiler_params=pltpu.CompilerParams(
            dimension_semantics=("parallel", "parallel"),
            vmem_limit_bytes=48 * 1024 * 1024,  # headroom on v7x (64 MiB physical)
        ),
        input_output_aliases=io_aliases,
    )(x, pe_table)


if __name__ == "__main__":
    # Module hyperparameters: max_seq_len=100, d_model=128 (module defaults).
    max_seq_len = 100
    d_model = 128

    key = jax.random.PRNGKey(0)
    kx, kpe, kx2, kx3 = jax.random.split(key, 4)

    # Deterministic "learnable" embedding table (nn.Embedding default init ~ N(0, 1)).
    pe_table = jax.random.normal(kpe, (max_seq_len, d_model), dtype=jnp.float32)

    # Check 1: f32, aligned seq_len; exercises batch folding + v7x >=2-block split.
    batch, seq_len = 4, 8
    x = jax.random.normal(kx, (batch, seq_len, d_model), dtype=jnp.float32)
    out = jax.block_until_ready(positional_encoding_forward(x, pe_table))
    ref = x + pe_table[:seq_len][None, :, :]
    assert out.shape == (batch, seq_len, d_model)
    assert out.dtype == ref.dtype
    assert jnp.allclose(out, ref, atol=1e-6, rtol=1e-6)

    # Check 2: seq_len not a multiple of 8 (previous version could not lower this).
    batch2, seq_len2 = 3, 5
    x2 = jax.random.normal(kx2, (batch2, seq_len2, d_model), dtype=jnp.float32)
    out2 = jax.block_until_ready(positional_encoding_forward(x2, pe_table))
    ref2 = x2 + pe_table[:seq_len2][None, :, :]
    assert out2.shape == (batch2, seq_len2, d_model)
    assert jnp.allclose(out2, ref2, atol=1e-6, rtol=1e-6)

    # Check 3: bf16 activations with an f32 table -> f32 output (PyTorch promotion).
    x3 = jax.random.normal(kx3, (batch, seq_len, d_model), dtype=jnp.bfloat16)
    out3 = jax.block_until_ready(positional_encoding_forward(x3, pe_table))
    ref3 = x3.astype(jnp.float32) + pe_table[:seq_len][None, :, :]
    assert out3.dtype == jnp.float32
    assert jnp.allclose(out3, ref3, atol=1e-6, rtol=1e-6)

    print("KERNEL_OK")
</pallas_src>

<mosaic_0001>
module attributes {stable_mosaic.version = 11 : i64} {
  func.func @_pe_add_kernel(%arg0: i32, %arg1: i32, %arg2: memref<2x8x128xf32, #tpu.memory_space<vmem>>, %arg3: memref<8x128xf32, #tpu.memory_space<vmem>>, %arg4: memref<2x8x128xf32, #tpu.memory_space<vmem>>) attributes {dimension_semantics = [#tpu.dimension_semantics<parallel>, #tpu.dimension_semantics<parallel>], iteration_bounds = array<i64: 1, 2>, scalar_prefetch = 0 : i64, scratch_operands = 0 : i64, tpu.core_type = #tpu.core_type<tc>, window_params = [{transform_indices = @transform_0, window_bounds = array<i64: 2, 8, 128>}, {transform_indices = @transform_1, window_bounds = array<i64: 8, 128>}, {transform_indices = @transform_2, window_bounds = array<i64: 2, 8, 128>}]} {
    %c0 = arith.constant 0 : index
    %c0_0 = arith.constant 0 : index
    %c0_1 = arith.constant 0 : index
    %0 = vector.load %arg2[%c0, %c0_0, %c0_1] : memref<2x8x128xf32, #tpu.memory_space<vmem>>, vector<2x8x128xf32>
    %c0_2 = arith.constant 0 : index
    %c0_3 = arith.constant 0 : index
    %1 = vector.load %arg3[%c0_2, %c0_3] : memref<8x128xf32, #tpu.memory_space<vmem>>, vector<8x128xf32>
    %2 = vector.shape_cast %1 : vector<8x128xf32> to vector<1x8x128xf32>
    %3 = vector.broadcast %2 : vector<1x8x128xf32> to vector<2x8x128xf32>
    %4 = arith.addf %0, %3 : vector<2x8x128xf32>
    %c0_4 = arith.constant 0 : index
    %c0_5 = arith.constant 0 : index
    %c0_6 = arith.constant 0 : index
    %5 = vector.load %arg4[%c0_4, %c0_5, %c0_6] : memref<2x8x128xf32, #tpu.memory_space<vmem>>, vector<2x8x128xf32>
    tpu.vector_store %arg4[%c0_4, %c0_5, %c0_6], %4 {strides = array<i32>} : memref<2x8x128xf32, #tpu.memory_space<vmem>>, vector<2x8x128xf32>,
    return
  }
  func.func @transform_0(%arg0: i32, %arg1: i32) -> (i32, i32, i32) {
    %c0_i32 = arith.constant 0 : i32
    %c0_i32_0 = arith.constant 0 : i32
    return %arg1, %arg0, %c0_i32 : i32, i32, i32
  }
  func.func @transform_1(%arg0: i32, %arg1: i32) -> (i32, i32) {
    %c0_i32 = arith.constant 0 : i32
    %c0_i32_0 = arith.constant 0 : i32
    return %arg0, %c0_i32 : i32, i32
  }
  func.func @transform_2(%arg0: i32, %arg1: i32) -> (i32, i32, i32) {
    %c0_i32 = arith.constant 0 : i32
    %c0_i32_0 = arith.constant 0 : i32
    return %arg1, %arg0, %c0_i32 : i32, i32, i32
  }
}

</mosaic_0001>

<bundles_post_ra>
// kernel: tpu_custom_call.1
= control target key start
LH: loop header
LB: loop body
LE: loop exit
PB: predicated region body
PF: predicated region fallthrough
CT: control target
= control target key end

     0   :  { %7 = vsyncpa [#allocation3], 0  ;;  %s755_s0 = inlined_call_operand.hbm [shape: f32[4,8,128], index: 0, kind: input, shape index: {}]   ;;  %s756_s1 = inlined_call_operand.hbm [shape: f32[100,128], index: 1, kind: input, shape index: {}]   ;;  %s757_s2 = inlined_call_operand.hbm [shape: f32[4,8,128], index: 2, kind: output, shape index: {}]  }
   0x1   :  { %9 = vsyncpa [#allocation3 + $0x1], 0 }
   0x2   :  { %10 = vsyncpa [#allocation6], 0 }
   0x3   :  { %11 = vsyncpa [#allocation4], 0 }
   0x4   :  { %13 = vsyncpa [#allocation4 + $0x1], 0  ;;  %s578_s9 = smov 0   ;;  %s580_s10 = smov 0  }
   0x5   :  { %s582_s11 = smov 0   ;;  %s584_s12 = smov 0  }
   0x6   :  { %s586_s13 = smov 0   ;;  %s588_s14 = smov 0  }
   0x7 LB: > { %s320_s15 = sadd.s32 4294967295, %s554_s14   ;;  %s321_s16 = sadd.s32 4294967294, %s554_s14   ;;  %s554_s14 = sphi %s588_s14, %s19_s14   ;;  %s550_s13 = sphi %s586_s13, %s776_s13   ;;  %s546_s12 = sphi %s584_s12, %s775_s12   ;;  %s542_s11 = sphi %s582_s11, %s774_s11   ;;  %s538_s10 = sphi %s580_s10, %s773_s10   ;;  %s534_s9 = sphi %s578_s9, %s772_s9  }
   0x8   : > { %s40_s17 = sadd.s32 1, %s542_s11  ;;  %p47_p0 = scmp.ne.s32.totalorder %s542_s11, %s538_s10 }
   0x9   : > { %p48_p1 = scmp.eq.s32.totalorder %s554_s14, 0  ;;  %p53_p2 = scmp.ne.s32.totalorder %s538_s10, %s534_s9 }
   0xa   : > { %p616_p3 = scmp.eq.s32.totalorder %s320_s15, 0  ;;  %p105_p4 = scmp.eq.s32.totalorder %s320_s15, 1 }
   0xb   : > { %p620_p5 = por %p48_p1, %p47_p0  ;;  %p111_p6 = scmp.eq.s32.totalorder %s321_s16, 1 }
   0xc   : > { %p626_p7 = por %p616_p3, %p53_p2  ;;  %p630_p8 = por %p105_p4, %p47_p0 }
   0xd   : > { %p634_p9 = por %p111_p6, %p53_p2  ;;  %p322_p10 = scmp.ge.s32.totalorder %s554_s14, 1 }
   0xe   : > { %s762_s20 = scalar_select %p626_p7, 1, 0 }
   0xf   : > { %s763_s21 = scalar_select %p630_p8, 1, 0 }
  0x10   : > { %s764_s22 = scalar_select %p634_p9, 1, 0 }
  0x11   : > { %p118_p11 = scmp.lt.s32.totalorder %s554_s14, 3  ;;  %s556_s24 = smov [#allocation5]  }
  0x12   : > { %s133_s25 = sshll.u32 %s556_s24, 4  ;;  %p360_p1 = scmp.lt.s32.totalorder %s554_s14, 2  ;;  %s134_s25 = int_to_ptr.vmem [resolvable:$true] %s133_s25 }
  0x13   : > { %p641_p13 = pnand %p322_p10, %p118_p11  ;;  %s28_s28 = sadd.s32 1, %s550_s13 }
  0x14   : > { %p650_p4 = pnand %p360_p1, %p620_p5  ;;  %p29_p6 = scmp.ge.s32.totalorder %s28_s28, 2 }
  0x15   : > { %p347_p0 = pneg %p641_p13  ;;  %s144_s29 = sand.u32 1, %s542_s11  }
  0x16   : > { %s427_s30 = scalar_lea.vmem %s134_s25, 128  ;;  %p435_p8 = scmp.lt.s32.totalorder %s134_s25, %s134_s25 }
  0x17   : > { %p656_p2 = pnand %p347_p0, %p616_p3  ;;  %p428_p11 = scmp.ne.s32.totalorder %s134_s25, %s427_s30 }
  0x18   : > { %p436_p5 = scmp.lt.s32.totalorder %s427_s30, %s427_s30 }
  0x19   : > { %p418_p10 = pneg %p656_p2 }
  0x1a   : > { %p437_p1 = por %p436_p5, %p435_p8 }
  0x1b   : > { %p430_p12 = pnand %p428_p11, %p418_p10 }
  0x1d   : > { %p431_p9 = pneg %p430_p12 }
  0x1f   : > { %p438_p7 = pnand %p437_p1, %p431_p9 }
  0x21   : > { %441 = shalt.err (!%p438_p7)
}
  0x22   : > { %350 = dma.hbm_to_vmem [thread:$0]  (!%p656_p2), %s756_s1, 128, %s134_s25, [#allocation6]  }
  0x23   : > { %s778_s28 = smov (%p29_p6, %s28_s28), 0  ;;  %s325_s5 = sshll.u32 %s144_s29, 4 }
  0x24   : > { %s35_s6 = ssub.s32 %s550_s13, %s778_s28  ;;  %s337_s7 = sshll.u32 %s550_s13, 8 }
  0x25   : > { %p38_p12 = scmp.eq.s32.totalorder %s35_s6, 0  ;;  %s155_s16 = scalar_lea.hbm %s755_s0, %s337_s7 }
  0x26   : > { %s148_s19 = scalar_lea.vmem [#allocation2], %s325_s5  ;;  %s145_s30 = scalar_lea.sflag [#allocation3], %s144_s29 }
  0x27   : > { %s156_s24 = sshll.u32 %s148_s19, 4  ;;  %p444_p7 = pneg %p650_p4  ;;  %s157_s24 = int_to_ptr.vmem [resolvable:$true] %s156_s24 }
  0x28   : > { %s680_s27 = scalar_select %p38_p12, %s542_s11, %s40_s17  }
  0x29   : > { %s455_s25 = scalar_lea.vmem %s157_s24, 256  ;;  %s557_s3 = smov [#allocation2]  }
  0x2a   : > { %p456_p8 = scmp.ne.s32.totalorder %s157_s24, %s455_s25  ;;  %s460_s4 = sshll.u32 %s557_s3, 4  ;;  %s461_s4 = int_to_ptr.vmem [resolvable:$false] %s460_s4 }
  0x2b   : > { %s462_s6 = scalar_lea.vmem %s461_s4, 512  ;;  %p463_p2 = scmp.lt.s32.totalorder %s157_s24, %s461_s4 }
  0x2c   : > { %p458_p9 = pnand %p456_p8, %p444_p7  ;;  %p464_p6 = scmp.lt.s32.totalorder %s462_s6, %s455_s25 }
  0x2e   : > { %p459_p0 = pneg %p458_p9  ;;  %p465_p10 = por %p464_p6, %p463_p2 }
  0x30   : > { %p466_p11 = pnand %p465_p10, %p459_p0 }
  0x32   : > { %469 = shalt.err (!%p466_p11)
}
  0x33   : > { %s558_s5 = smov 128   ;;  %s559_s17 = smov 8  }
  0x34   : > { %354 = dma.hbm_to_vmem [thread:$0]  (!%p650_p4), %s155_s16, 256, %s157_s24, %s145_s30, %s558_s5, %s558_s5, %s559_s17  }
  0x35   : > { %168 = sbr.rel (%p641_p13) target bundleno = 87 (0x57), region = 28  ;;  %s689_s29 = sand.u32 (!%p641_p13), 1, %s538_s10  }
  0x36   : > { %s329_s7 = sshll.u32 (!%p641_p13), %s689_s29, 4  ;;  %s171_s8 = scalar_lea.sflag (!%p641_p13), [#allocation3], %s689_s29 }
  0x37   : > { %s174_s15 = scalar_lea.vmem (!%p641_p13), [#allocation2], %s329_s7  ;;  %p768_p5 = scmp.ne.s32.totalorder (!%p641_p13), %s762_s20, 0 }
  0x3a   : > { %521 = dma.done.wait (%p768_p5), %s171_s8, 256  }
  0x3b   : > { %523 = vsyncadd (%p768_p5), %s171_s8, 4294967040 }
  0x3c   : > { %525 = dma.done.wait (%p616_p3), [#allocation6], 128  }
  0x3d   : > { %527 = vsyncadd (%p616_p3), [#allocation6], 4294967168  ;;  %s198_s23 = scalar_lea.vmem [#allocation7], %s329_s7  ;;  %s338_s16 = sshll.u32 %s546_s12, 8  ;;  %v201_v0 = vld [vmem:[%s174_s15] sm:$0xff]  ;;  %v202_v2 = vld [vmem:[%s174_s15 + $0x8] sm:$0xff] }
  0x3e   : > { %s223_s26 = sshll.u32 %s198_s23, 4  ;;  %v203_v1 = vld [vmem:[#allocation5] sm:$0xff]  ;;  %s707_s24 = scalar_lea.hbm %s757_s2, %s338_s16  ;;  %s702_s26 = int_to_ptr.vmem [resolvable:$true] %s223_s26 }
  0x3f   : > { %v204_v3 = vadd.f32 %v203_v1, %v201_v0  ;;  %v205_v4 = vadd.f32 %v203_v1, %v202_v2  ;;  %s209_s18 = scalar_lea.sflag [#allocation4], %s689_s29  ;;  %s470_s30 = scalar_lea.vmem %s702_s26, 256 }
  0x40   : > { %p471_p3 = scmp.ne.s32.totalorder %s702_s26, %s470_s30  ;;  %p769_p13 = scmp.ne.s32.totalorder %s763_s21, 0 }
  0x41   : > { %206 = vst [vmem:[%s198_s23] sm:$0xff] %v204_v3  ;;  %207 = vst [vmem:[%s198_s23 + $0x8] sm:$0xff] %v205_v4  ;;  %s560_s12 = smov [#allocation7]  }
  0x42   : > { %p472_p4 = pnand %p471_p3, %p769_p13  ;;  %s474_s25 = sshll.u32 %s560_s12, 4  ;;  %s475_s25 = int_to_ptr.vmem [resolvable:$false] %s474_s25 }
  0x43   : > { %s476_s3 = scalar_lea.vmem %s475_s25, 512  ;;  %p477_p12 = scmp.lt.s32.totalorder %s702_s26, %s475_s25 }
  0x44   : > { %p473_p1 = pneg %p472_p4  ;;  %p478_p7 = scmp.lt.s32.totalorder %s476_s3, %s470_s30 }
  0x46   : > { %p479_p8 = por %p478_p7, %p477_p12 }
  0x48   : > { %p480_p9 = pnand %p479_p8, %p473_p1 }
  0x4a   : > { %483 = shalt.err (!%p480_p9)
}
  0x4b   : > { %s484_s4 = scalar_lea.hbm %s707_s24, 256  ;;  %s488_s17 = scalar_lea.hbm %s757_s2, 512 }
  0x4c   : > { %p485_p0 = scmp.ne.s32.totalorder %s707_s24, %s484_s4  ;;  %p489_p10 = scmp.lt.s32.totalorder %s707_s24, %s757_s2 }
  0x4d   : > { %p490_p11 = scmp.lt.s32.totalorder %s488_s17, %s484_s4 }
  0x4e   : > { %p486_p2 = pnand %p485_p0, %p769_p13 }
  0x4f   : > { %p491_p5 = por %p490_p11, %p489_p10 }
  0x50   : > { %p487_p6 = pneg %p486_p2 }
  0x52   : > { %p492_p3 = pnand %p491_p5, %p487_p6 }
  0x54   : > { %495 = shalt.err (!%p492_p3)
}
  0x55   : > { %s561_s15 = smov 128   ;;  %s562_s23 = smov 8  }
  0x56   : > { %345 = dma.vmem_to_hbm [thread:$0]  (%p769_p13), %s702_s26, 256, %s707_s24, %s209_s18, %s561_s15, %s561_s15, %s562_s23  }
  0x57 PF: > { %s238_s16 = sand.u32 1, %s534_s9   ;;  %p770_p4 = scmp.ne.s32.totalorder %s764_s22, 0 }
  0x58   : > { %p771_p1 = scmp.ge.s32.totalorder %s554_s14, 2  ;;  %s239_s20 = scalar_lea.sflag [#allocation4], %s238_s16 }
  0x5a   : > { %p356_p12 = pnand %p771_p1, %p770_p4 }
  0x5c   : > { %p357_p7 = pneg %p356_p12 }
  0x5e   : > { %529 = dma.done.wait (%p357_p7), %s239_s20, 256  }
  0x5f   : > { %531 = vsyncadd (%p357_p7), %s239_s20, 4294967040  ;;  %s19_s14 = sadd.s32 1, %s554_s14   ;;  %s772_s9 = smov %s538_s10 }
  0x60   : > { %p16_p8 = scmp.ge.s32.totalorder %s19_s14, 4   ;;  %s773_s10 = smov %s542_s11 }
  0x61   : > { %s774_s11 = smov %s680_s27  ;;  %s775_s12 = smov %s550_s13 }
  0x62   : > { %s776_s13 = smov %s778_s28  ;;  %18 = sbr.rel (!%p16_p8) target bundleno = 7 (0x7), region = 78 }
  0x67   :  { %244 = vsyncpa [#allocation3], 1 }
  0x68   :  { %246 = vsyncpa [#allocation3 + $0x1], 1 }
  0x69   :  { %247 = vsyncpa [#allocation6], 1 }
  0x6a   :  { %248 = vsyncpa [#allocation4], 1 }
  0x6b   :  { %250 = vsyncpa [#allocation4 + $0x1], 1 }

</bundles_post_ra>
